<compile_context>
chip_gen: v5e
topology: v5e:2x2
jax: 0.10.0
libtpu: 0.0.40
codegen_flags: <defaults>
</compile_context>

<pallas_src>
import functools

import jax
import jax.numpy as jnp
from jax.experimental import pallas as pl
from jax.experimental.pallas import tpu as pltpu

N_STATES = 33
N_ACTIONS = 4
N_HIDDEN = 50

_SELU_ALPHA = 1.6732632423543772848170429916717
_SELU_SCALE = 1.0507009873554804934193349852946


def _selu(x):
    # Discarded exp branch may produce inf (never NaN) for large positive x.
    return _SELU_SCALE * jnp.where(x > 0, x, _SELU_ALPHA * (jnp.exp(x) - 1.0))


def _round_up(x, m):
    return ((x + m - 1) // m) * m


def actor_kernel(x_ref,
                 w1_ref, b1_ref,
                 w2_ref, b2_ref,
                 w3_ref, b3_ref,
                 w4_ref, b4_ref,
                 o_ref):
    """Feature-major MLP: activations are (features, tile), lane axis = batch."""
    # All matmul / activation math in f32 (state stream may be bf16).
    x = x_ref[...].astype(jnp.float32)                      # (tile, 33)

    # h1[f, b] = sum_k W1[f, k] * x[b, k]  -> (50, tile); lane axis dense.
    h = jax.lax.dot_general(
        w1_ref[...], x,
        dimension_numbers=(((1,), (1,)), ((), ())),
        preferred_element_type=jnp.float32) + b1_ref[...]
    h = _selu(h)

    h = jnp.dot(w2_ref[...], h, preferred_element_type=jnp.float32) + b2_ref[...]
    h = _selu(h)                                            # (25, tile)

    h = jnp.dot(w3_ref[...], h, preferred_element_type=jnp.float32) + b3_ref[...]
    h = _selu(h)                                            # (12, tile)

    out = jnp.dot(w4_ref[...], h, preferred_element_type=jnp.float32) + b4_ref[...]
    o_ref[...] = jnp.tanh(out).astype(o_ref.dtype)          # (4, tile), lane-dense


def _pick_tile(B, max_tile):
    """Return (tile, B_pad).

    Small B: single step, sublane-aligned tile (output store may be masked,
    irrelevant at that size).  Large B: tile = round_up(ceil(B/n_steps), 128)
    with an even n_steps so v7x's two TCs get balanced work and padding waste
    stays < one 128-row sliver per step.
    """
    if B <= 128:
        tile = _round_up(B, 8)
        return tile, tile
    n_steps = pl.cdiv(B, max_tile)
    if B >= 1024:
        n_steps = max(n_steps, 2)          # let the parallel axis split on v7x
    if n_steps > 1 and n_steps % 2 == 1:
        n_steps += 1                       # even step count -> balanced TCs
    tile = _round_up(pl.cdiv(B, n_steps), 128)
    return tile, tile * n_steps


@functools.partial(jax.jit, static_argnames=("max_tile", "transposed_output"))
def actor_forward(state, params, max_tile=4096, transposed_output=False):
    """state: (B, 33) f32 or bf16 (bf16 recommended on v6e/v7x).

    Returns (B, 4) in state.dtype, or the raw lane-dense (4, B) slab if
    transposed_output=True (skips one XLA transpose pass).
    """
    B, n_states = state.shape
    assert n_states == N_STATES
    w1, b1, w2, b2, w3, b3, w4, b4 = params   # torch-native: W (out,in), b (out,)

    tile, B_pad = _pick_tile(B, max_tile)
    if B_pad != B:
        state = jnp.pad(state, ((0, B_pad - B), (0, 0)))

    # Biases as (out, 1) columns so they broadcast over the lane (batch) axis.
    b1c = b1.reshape(-1, 1)
    b2c = b2.reshape(-1, 1)
    b3c = b3.reshape(-1, 1)
    b4c = b4.reshape(-1, 1)

    rep = lambda a: pl.BlockSpec(a.shape, lambda i: (0, 0))
    grid = B_pad // tile

    param_bytes = sum(int(p.size) * p.dtype.itemsize
                      for p in (w1, b1, w2, b2, w3, b3, w4, b4))
    cost = pl.CostEstimate(
        flops=2 * B_pad * (N_STATES * N_HIDDEN
                           + N_HIDDEN * (N_HIDDEN // 2)
                           + (N_HIDDEN // 2) * (N_HIDDEN // 4)
                           + (N_HIDDEN // 4) * N_ACTIONS),
        transcendentals=B_pad * (N_HIDDEN + N_HIDDEN // 2 + N_HIDDEN // 4
                                 + N_ACTIONS),
        bytes_accessed=B_pad * (N_STATES + N_ACTIONS) * state.dtype.itemsize
                       + param_bytes,
    )

    out_t = pl.pallas_call(
        actor_kernel,
        out_shape=jax.ShapeDtypeStruct((N_ACTIONS, B_pad), state.dtype),
        grid_spec=pltpu.PrefetchScalarGridSpec(
            num_scalar_prefetch=0,
            grid=(grid,),
            in_specs=[
                pl.BlockSpec((tile, N_STATES), lambda i: (i, 0)),
                rep(w1), rep(b1c),
                rep(w2), rep(b2c),
                rep(w3), rep(b3c),
                rep(w4), rep(b4c),
            ],
            out_specs=pl.BlockSpec((N_ACTIONS, tile), lambda i: (0, i)),
        ),
        compiler_params=pltpu.CompilerParams(
            dimension_semantics=("parallel",)),
        cost_estimate=cost,
    )(state, w1, b1c, w2, b2c, w3, b3c, w4, b4c)

    if transposed_output:
        return out_t[:, :B]
    # Transposed (4, B) kernel output -> module's (B, 4); drop padded rows.
    return out_t[:, :B].T


def init_params(key):
    """Deterministic init mimicking nn.Linear default (U[-1/sqrt(fan_in), +]).

    Stored torch-native: W (out_features, in_features), b (out_features,).
    """
    dims = [(N_STATES, N_HIDDEN),
            (N_HIDDEN, N_HIDDEN // 2),
            (N_HIDDEN // 2, N_HIDDEN // 4),
            (N_HIDDEN // 4, N_ACTIONS)]
    params = []
    for (fan_in, fan_out) in dims:
        key, kw, kb = jax.random.split(key, 3)
        bound = 1.0 / jnp.sqrt(fan_in)
        w = jax.random.uniform(kw, (fan_out, fan_in), jnp.float32, -bound, bound)
        b = jax.random.uniform(kb, (fan_out,), jnp.float32, -bound, bound)
        params += [w, b]
    return tuple(params)


def reference_forward(state, params):
    w1, b1, w2, b2, w3, b3, w4, b4 = params
    h = jax.nn.selu(state @ w1.T + b1)
    h = jax.nn.selu(h @ w2.T + b2)
    h = jax.nn.selu(h @ w3.T + b3)
    return jnp.tanh(h @ w4.T + b4)


if __name__ == "__main__":
    key = jax.random.PRNGKey(0)
    kp, kx = jax.random.split(key)
    params = init_params(kp)

    B = 512
    state = jax.random.normal(kx, (B, N_STATES), jnp.float32)
    ref = reference_forward(state, params)

    # f32, single grid step (default max_tile)
    out = jax.block_until_ready(actor_forward(state, params))
    assert out.shape == (B, N_ACTIONS)
    assert jnp.allclose(out, ref, atol=1e-5, rtol=1e-5), "f32 mismatch vs reference"

    # f32, forced multi-step grid (tile=128 -> 4 parallel steps)
    out_ms = jax.block_until_ready(actor_forward(state, params, max_tile=128))
    assert jnp.allclose(out_ms, ref, atol=1e-5, rtol=1e-5), "multi-step mismatch"

    # ragged small batch (exercises padding / single-step small-tile path)
    out_small = jax.block_until_ready(actor_forward(state[:100], params))
    assert out_small.shape == (100, N_ACTIONS)
    assert jnp.allclose(out_small, ref[:100], atol=1e-5, rtol=1e-5), "ragged mismatch"

    # bf16 state stream (kernel upcasts to f32 internally; halves HBM reads)
    state_bf16 = state.astype(jnp.bfloat16)
    out_bf16 = jax.block_until_ready(actor_forward(state_bf16, params))
    ref_bf16 = reference_forward(state_bf16.astype(jnp.float32), params)
    assert jnp.allclose(out_bf16.astype(jnp.float32), ref_bf16,
                        atol=2e-2, rtol=2e-2), "bf16 mismatch vs reference"

    # lane-dense (4, B) output path (skips wrapper transpose)
    out_tp = jax.block_until_ready(
        actor_forward(state, params, transposed_output=True))
    assert out_tp.shape == (N_ACTIONS, B)
    assert jnp.allclose(out_tp.T, ref, atol=1e-5, rtol=1e-5), "transposed mismatch"

    print("KERNEL_OK")
</pallas_src>

<mosaic_0001>
module attributes {stable_mosaic.version = 11 : i64} {
  func.func @actor_kernel(%arg0: i32, %arg1: memref<512x33xf32, #tpu.memory_space<vmem>>, %arg2: memref<50x33xf32, #tpu.memory_space<vmem>>, %arg3: memref<50x1xf32, #tpu.memory_space<vmem>>, %arg4: memref<25x50xf32, #tpu.memory_space<vmem>>, %arg5: memref<25x1xf32, #tpu.memory_space<vmem>>, %arg6: memref<12x25xf32, #tpu.memory_space<vmem>>, %arg7: memref<12x1xf32, #tpu.memory_space<vmem>>, %arg8: memref<4x12xf32, #tpu.memory_space<vmem>>, %arg9: memref<4x1xf32, #tpu.memory_space<vmem>>, %arg10: memref<4x512xf32, #tpu.memory_space<vmem>>) attributes {dimension_semantics = [#tpu.dimension_semantics<parallel>], iteration_bounds = array<i64: 1>, scalar_prefetch = 0 : i64, scratch_operands = 0 : i64, tpu.core_type = #tpu.core_type<tc>, window_params = [{transform_indices = @transform_0, window_bounds = array<i64: 512, 33>}, {pipeline_mode = #tpu.pipeline_mode<synchronous>, transform_indices = @transform_1, window_bounds = array<i64: 50, 33>}, {pipeline_mode = #tpu.pipeline_mode<synchronous>, transform_indices = @transform_2, window_bounds = array<i64: 50, 1>}, {pipeline_mode = #tpu.pipeline_mode<synchronous>, transform_indices = @transform_3, window_bounds = array<i64: 25, 50>}, {pipeline_mode = #tpu.pipeline_mode<synchronous>, transform_indices = @transform_4, window_bounds = array<i64: 25, 1>}, {pipeline_mode = #tpu.pipeline_mode<synchronous>, transform_indices = @transform_5, window_bounds = array<i64: 12, 25>}, {pipeline_mode = #tpu.pipeline_mode<synchronous>, transform_indices = @transform_6, window_bounds = array<i64: 12, 1>}, {pipeline_mode = #tpu.pipeline_mode<synchronous>, transform_indices = @transform_7, window_bounds = array<i64: 4, 12>}, {pipeline_mode = #tpu.pipeline_mode<synchronous>, transform_indices = @transform_8, window_bounds = array<i64: 4, 1>}, {transform_indices = @transform_9, window_bounds = array<i64: 4, 512>}]} {
    %c0 = arith.constant 0 : index
    %c0_0 = arith.constant 0 : index
    %0 = vector.load %arg1[%c0, %c0_0] : memref<512x33xf32, #tpu.memory_space<vmem>>, vector<512x33xf32>
    %c0_1 = arith.constant 0 : index
    %c0_2 = arith.constant 0 : index
    %1 = vector.load %arg2[%c0_1, %c0_2] : memref<50x33xf32, #tpu.memory_space<vmem>>, vector<50x33xf32>
    %cst = arith.constant dense<0.000000e+00> : vector<50x512xf32>
    %2 = tpu.matmul %1, %0, %cst {dimension_numbers = #tpu.dot_dimension_numbers<[1], [1], [0], [0], [0, 0, 1, 0], [], []>} : vector<50x33xf32>, vector<512x33xf32>, vector<50x512xf32> -> vector<50x512xf32>
    %c0_3 = arith.constant 0 : index
    %c0_4 = arith.constant 0 : index
    %3 = vector.load %arg3[%c0_3, %c0_4] : memref<50x1xf32, #tpu.memory_space<vmem>>, vector<50x1xf32>
    %4 = vector.broadcast %3 : vector<50x1xf32> to vector<50x512xf32>
    %5 = arith.addf %2, %4 : vector<50x512xf32>
    %cst_5 = arith.constant 0.000000e+00 : f32
    %6 = vector.broadcast %cst_5 : f32 to vector<50x512xf32>
    %7 = arith.cmpf ogt, %5, %6 : vector<50x512xf32>
    %8 = math.exp %5 : vector<50x512xf32>
    %cst_6 = arith.constant 1.000000e+00 : f32
    %9 = vector.broadcast %cst_6 : f32 to vector<50x512xf32>
    %10 = arith.subf %8, %9 : vector<50x512xf32>
    %cst_7 = arith.constant 1.67326319 : f32
    %11 = vector.broadcast %cst_7 : f32 to vector<50x512xf32>
    %12 = arith.mulf %11, %10 : vector<50x512xf32>
    %13 = arith.select %7, %5, %12 : vector<50x512xi1>, vector<50x512xf32>
    %cst_8 = arith.constant 1.05070102 : f32
    %14 = vector.broadcast %cst_8 : f32 to vector<50x512xf32>
    %15 = arith.mulf %14, %13 : vector<50x512xf32>
    %c0_9 = arith.constant 0 : index
    %c0_10 = arith.constant 0 : index
    %16 = vector.load %arg4[%c0_9, %c0_10] : memref<25x50xf32, #tpu.memory_space<vmem>>, vector<25x50xf32>
    %cst_11 = arith.constant dense<0.000000e+00> : vector<25x512xf32>
    %17 = tpu.matmul %16, %15, %cst_11 {dimension_numbers = #tpu.dot_dimension_numbers<[1], [0], [0], [1], [0, 0, 1, 1], [], []>} : vector<25x50xf32>, vector<50x512xf32>, vector<25x512xf32> -> vector<25x512xf32>
    %c0_12 = arith.constant 0 : index
    %c0_13 = arith.constant 0 : index
    %18 = vector.load %arg5[%c0_12, %c0_13] : memref<25x1xf32, #tpu.memory_space<vmem>>, vector<25x1xf32>
    %19 = vector.broadcast %18 : vector<25x1xf32> to vector<25x512xf32>
    %20 = arith.addf %17, %19 : vector<25x512xf32>
    %cst_14 = arith.constant 0.000000e+00 : f32
    %21 = vector.broadcast %cst_14 : f32 to vector<25x512xf32>
    %22 = arith.cmpf ogt, %20, %21 : vector<25x512xf32>
    %23 = math.exp %20 : vector<25x512xf32>
    %cst_15 = arith.constant 1.000000e+00 : f32
    %24 = vector.broadcast %cst_15 : f32 to vector<25x512xf32>
    %25 = arith.subf %23, %24 : vector<25x512xf32>
    %cst_16 = arith.constant 1.67326319 : f32
    %26 = vector.broadcast %cst_16 : f32 to vector<25x512xf32>
    %27 = arith.mulf %26, %25 : vector<25x512xf32>
    %28 = arith.select %22, %20, %27 : vector<25x512xi1>, vector<25x512xf32>
    %cst_17 = arith.constant 1.05070102 : f32
    %29 = vector.broadcast %cst_17 : f32 to vector<25x512xf32>
    %30 = arith.mulf %29, %28 : vector<25x512xf32>
    %c0_18 = arith.constant 0 : index
    %c0_19 = arith.constant 0 : index
    %31 = vector.load %arg6[%c0_18, %c0_19] : memref<12x25xf32, #tpu.memory_space<vmem>>, vector<12x25xf32>
    %cst_20 = arith.constant dense<0.000000e+00> : vector<12x512xf32>
    %32 = tpu.matmul %31, %30, %cst_20 {dimension_numbers = #tpu.dot_dimension_numbers<[1], [0], [0], [1], [0, 0, 1, 1], [], []>} : vector<12x25xf32>, vector<25x512xf32>, vector<12x512xf32> -> vector<12x512xf32>
    %c0_21 = arith.constant 0 : index
    %c0_22 = arith.constant 0 : index
    %33 = vector.load %arg7[%c0_21, %c0_22] : memref<12x1xf32, #tpu.memory_space<vmem>>, vector<12x1xf32>
    %34 = vector.broadcast %33 : vector<12x1xf32> to vector<12x512xf32>
    %35 = arith.addf %32, %34 : vector<12x512xf32>
    %cst_23 = arith.constant 0.000000e+00 : f32
    %36 = vector.broadcast %cst_23 : f32 to vector<12x512xf32>
    %37 = arith.cmpf ogt, %35, %36 : vector<12x512xf32>
    %38 = math.exp %35 : vector<12x512xf32>
    %cst_24 = arith.constant 1.000000e+00 : f32
    %39 = vector.broadcast %cst_24 : f32 to vector<12x512xf32>
    %40 = arith.subf %38, %39 : vector<12x512xf32>
    %cst_25 = arith.constant 1.67326319 : f32
    %41 = vector.broadcast %cst_25 : f32 to vector<12x512xf32>
    %42 = arith.mulf %41, %40 : vector<12x512xf32>
    %43 = arith.select %37, %35, %42 : vector<12x512xi1>, vector<12x512xf32>
    %cst_26 = arith.constant 1.05070102 : f32
    %44 = vector.broadcast %cst_26 : f32 to vector<12x512xf32>
    %45 = arith.mulf %44, %43 : vector<12x512xf32>
    %c0_27 = arith.constant 0 : index
    %c0_28 = arith.constant 0 : index
    %46 = vector.load %arg8[%c0_27, %c0_28] : memref<4x12xf32, #tpu.memory_space<vmem>>, vector<4x12xf32>
    %cst_29 = arith.constant dense<0.000000e+00> : vector<4x512xf32>
    %47 = tpu.matmul %46, %45, %cst_29 {dimension_numbers = #tpu.dot_dimension_numbers<[1], [0], [0], [1], [0, 0, 1, 1], [], []>} : vector<4x12xf32>, vector<12x512xf32>, vector<4x512xf32> -> vector<4x512xf32>
    %c0_30 = arith.constant 0 : index
    %c0_31 = arith.constant 0 : index
    %48 = vector.load %arg9[%c0_30, %c0_31] : memref<4x1xf32, #tpu.memory_space<vmem>>, vector<4x1xf32>
    %49 = vector.broadcast %48 : vector<4x1xf32> to vector<4x512xf32>
    %50 = arith.addf %47, %49 : vector<4x512xf32>
    %51 = math.tanh %50 : vector<4x512xf32>
    %c0_32 = arith.constant 0 : index
    %c0_33 = arith.constant 0 : index
    %52 = vector.load %arg10[%c0_32, %c0_33] : memref<4x512xf32, #tpu.memory_space<vmem>>, vector<4x512xf32>
    tpu.vector_store %arg10[%c0_32, %c0_33], %51 {strides = array<i32>} : memref<4x512xf32, #tpu.memory_space<vmem>>, vector<4x512xf32>,
    return
  }
  func.func @transform_0(%arg0: i32) -> (i32, i32) {
    %c0_i32 = arith.constant 0 : i32
    %c0_i32_0 = arith.constant 0 : i32
    return %arg0, %c0_i32 : i32, i32
  }
  func.func @transform_1(%arg0: i32) -> (i32, i32) {
    %c0_i32 = arith.constant 0 : i32
    %c0_i32_0 = arith.constant 0 : i32
    %c0_i32_1 = arith.constant 0 : i32
    return %c0_i32, %c0_i32_0 : i32, i32
  }
  func.func @transform_2(%arg0: i32) -> (i32, i32) {
    %c0_i32 = arith.constant 0 : i32
    %c0_i32_0 = arith.constant 0 : i32
    %c0_i32_1 = arith.constant 0 : i32
    return %c0_i32, %c0_i32_0 : i32, i32
  }
  func.func @transform_3(%arg0: i32) -> (i32, i32) {
    %c0_i32 = arith.constant 0 : i32
    %c0_i32_0 = arith.constant 0 : i32
    %c0_i32_1 = arith.constant 0 : i32
    return %c0_i32, %c0_i32_0 : i32, i32
  }
  func.func @transform_4(%arg0: i32) -> (i32, i32) {
    %c0_i32 = arith.constant 0 : i32
    %c0_i32_0 = arith.constant 0 : i32
    %c0_i32_1 = arith.constant 0 : i32
    return %c0_i32, %c0_i32_0 : i32, i32
  }
  func.func @transform_5(%arg0: i32) -> (i32, i32) {
    %c0_i32 = arith.constant 0 : i32
    %c0_i32_0 = arith.constant 0 : i32
    %c0_i32_1 = arith.constant 0 : i32
    return %c0_i32, %c0_i32_0 : i32, i32
  }
  func.func @transform_6(%arg0: i32) -> (i32, i32) {
    %c0_i32 = arith.constant 0 : i32
    %c0_i32_0 = arith.constant 0 : i32
    %c0_i32_1 = arith.constant 0 : i32
    return %c0_i32, %c0_i32_0 : i32, i32
  }
  func.func @transform_7(%arg0: i32) -> (i32, i32) {
    %c0_i32 = arith.constant 0 : i32
    %c0_i32_0 = arith.constant 0 : i32
    %c0_i32_1 = arith.constant 0 : i32
    return %c0_i32, %c0_i32_0 : i32, i32
  }
  func.func @transform_8(%arg0: i32) -> (i32, i32) {
    %c0_i32 = arith.constant 0 : i32
    %c0_i32_0 = arith.constant 0 : i32
    %c0_i32_1 = arith.constant 0 : i32
    return %c0_i32, %c0_i32_0 : i32, i32
  }
  func.func @transform_9(%arg0: i32) -> (i32, i32) {
    %c0_i32 = arith.constant 0 : i32
    %c0_i32_0 = arith.constant 0 : i32
    return %c0_i32, %arg0 : i32, i32
  }
}

</mosaic_0001>

<bundles_post_ra>
// kernel: actor_forward.1
= control target key start
LH: loop header
LB: loop body
LE: loop exit
PB: predicated region body
PF: predicated region fallthrough
CT: control target
= control target key end

     0   :  { %vm146_vm0 = vcmask 269312   ;;  %s2430_s0 = inlined_call_operand.vmem [shape: f32[512,33], index: 0, kind: input, shape index: {}]   ;;  %s2431_s1 = inlined_call_operand.vmem [shape: f32[50,33], index: 1, kind: input, shape index: {}]   ;;  %s2432_s2 = inlined_call_operand.vmem [shape: f32[50,1], index: 2, kind: input, shape index: {}]   ;;  %s2433_s3 = inlined_call_operand.vmem [shape: f32[25,50], index: 3, kind: input, shape index: {}]   ;;  %s2434_s4 = inlined_call_operand.vmem [shape: f32[25,1], index: 4, kind: input, shape index: {}]   ;;  %s2435_s5 = inlined_call_operand.vmem [shape: f32[12,25], index: 5, kind: input, shape index: {}]   ;;  %s2436_s6 = inlined_call_operand.vmem [shape: f32[12,1], index: 6, kind: input, shape index: {}]   ;;  %s2437_s7 = inlined_call_operand.vmem [shape: f32[4,12], index: 7, kind: input, shape index: {}]   ;;  %s2438_s8 = inlined_call_operand.vmem [shape: f32[4,1], index: 8, kind: input, shape index: {}]   ;;  %s2439_s9 = inlined_call_operand.hbm [shape: f32[4,512], index: 9, kind: output, shape index: {}]  }
   0x1   :  { %v48_v0 = vld [vmem:[%s2430_s0 + $0x78] sm:$0xff]  ;;  %v47_v4 = vld [vmem:[%s2430_s0 + $0x70] sm:$0xff]  ;;  %v46_v8 = vld [vmem:[%s2430_s0 + $0x68] sm:$0xff] }
   0x2   :  { %v64_v1 = vld [vmem:[%s2430_s0 + $0xf8] sm:$0xff]  ;;  %1308 = vmatpush.xpose.msk.msra.mxu0 %vm146_vm0, %v48_v0  ;;  %v63_v5 = vld [vmem:[%s2430_s0 + $0xf0] sm:$0xff]  ;;  %v62_v9 = vld [vmem:[%s2430_s0 + $0xe8] sm:$0xff] }
   0x3   :  { %v80_v2 = vld [vmem:[%s2430_s0 + $0x178] sm:$0xff]  ;;  %1331 = vmatpush.xpose.msk.msra.mxu1 %vm146_vm0, %v64_v1  ;;  %v79_v6 = vld [vmem:[%s2430_s0 + $0x170] sm:$0xff]  ;;  %v78_v10 = vld [vmem:[%s2430_s0 + $0x168] sm:$0xff] }
   0x4   :  { %v96_v3 = vld [vmem:[%s2430_s0 + $0x1f8] sm:$0xff]  ;;  %1354 = vmatpush.xpose.msk.msra.mxu2 %vm146_vm0, %v80_v2  ;;  %v95_v7 = vld [vmem:[%s2430_s0 + $0x1f0] sm:$0xff]  ;;  %v94_v11 = vld [vmem:[%s2430_s0 + $0x1e8] sm:$0xff] }
   0x5   :  { %1377 = vmatpush.xpose.msk.msra.mxu3 %vm146_vm0, %v96_v3  ;;  %v45_v12 = vld [vmem:[%s2430_s0 + $0x60] sm:$0xff]  ;;  %v44_v16 = vld [vmem:[%s2430_s0 + $0x58] sm:$0xff] }
   0x6   :  { %1309 = vmatpush.xpose.msk.msra.mxu0 %vm146_vm0, %v47_v4  ;;  %v61_v13 = vld [vmem:[%s2430_s0 + $0xe0] sm:$0xff]  ;;  %v60_v17 = vld [vmem:[%s2430_s0 + $0xd8] sm:$0xff] }
   0x7   :  { %1332 = vmatpush.xpose.msk.msra.mxu1 %vm146_vm0, %v63_v5  ;;  %v77_v14 = vld [vmem:[%s2430_s0 + $0x160] sm:$0xff]  ;;  %v76_v18 = vld [vmem:[%s2430_s0 + $0x158] sm:$0xff] }
   0x8   :  { %1355 = vmatpush.xpose.msk.msra.mxu2 %vm146_vm0, %v79_v6  ;;  %v93_v15 = vld [vmem:[%s2430_s0 + $0x1e0] sm:$0xff]  ;;  %v92_v19 = vld [vmem:[%s2430_s0 + $0x1d8] sm:$0xff] }
   0x9   :  { %1378 = vmatpush.xpose.msk.msra.mxu3 %vm146_vm0, %v95_v7 }
   0xa   :  { %1310 = vmatpush.xpose.msk.msra.mxu0 %vm146_vm0, %v46_v8 }
   0xb   :  { %1333 = vmatpush.xpose.msk.msra.mxu1 %vm146_vm0, %v62_v9 }
   0xc   :  { %1356 = vmatpush.xpose.msk.msra.mxu2 %vm146_vm0, %v78_v10 }
   0xd   :  { %1379 = vmatpush.xpose.msk.msra.mxu3 %vm146_vm0, %v94_v11 }
   0xe   :  { %1311 = vmatpush.xpose.msk.msra.mxu0 %vm146_vm0, %v45_v12 }
   0xf   :  { %1334 = vmatpush.xpose.msk.msra.mxu1 %vm146_vm0, %v61_v13 }
  0x10   :  { %1357 = vmatpush.xpose.msk.msra.mxu2 %vm146_vm0, %v77_v14 }
  0x11   :  { %1380 = vmatpush.xpose.msk.msra.mxu3 %vm146_vm0, %v93_v15 }
  0x12   :  { %14 = vsyncpa [#allocation3], 0  ;;  %1312 = vmatpush.xpose.msk.msra.mxu0 %vm146_vm0, %v44_v16  ;;  %v43_v20 = vld [vmem:[%s2430_s0 + $0x50] sm:$0xff]  ;;  %v42_v24 = vld [vmem:[%s2430_s0 + $0x48] sm:$0xff]  ;;  %v1635_v36 = vmov 0   ;;  %vm749_vm11 = vcmask 1041408  }
  0x13   :  { %1335 = vmatpush.xpose.msk.msra.mxu1 %vm146_vm0, %v60_v17  ;;  %v59_v21 = vld [vmem:[%s2430_s0 + $0xd0] sm:$0xff]  ;;  %v58_v25 = vld [vmem:[%s2430_s0 + $0xc8] sm:$0xff]  ;;  %v41_v28 = vld [vmem:[%s2430_s0 + $0x40] sm:$0xff]  ;;  %1494 = vset.pattern.permute.xlu0 %v1635_v36 }
  0x14   :  { %1358 = vmatpush.xpose.msk.msra.mxu2 %vm146_vm0, %v76_v18  ;;  %v75_v22 = vld [vmem:[%s2430_s0 + $0x150] sm:$0xff]  ;;  %v74_v26 = vld [vmem:[%s2430_s0 + $0x148] sm:$0xff]  ;;  %v57_v29 = vld [vmem:[%s2430_s0 + $0xc0] sm:$0xff]  ;;  %1495 = vset.pattern.permute.xlu1 %v1635_v36 }
  0x15   :  { %1381 = vmatpush.xpose.msk.msra.mxu3 %vm146_vm0, %v92_v19  ;;  %v91_v23 = vld [vmem:[%s2430_s0 + $0x1d0] sm:$0xff]  ;;  %v90_v27 = vld [vmem:[%s2430_s0 + $0x1c8] sm:$0xff]  ;;  %v73_v30 = vld [vmem:[%s2430_s0 + $0x140] sm:$0xff]  ;;  %1496 = vset.pattern.permute.xlu2 %v1635_v36 }
  0x16   :  { %1313 = vmatpush.xpose.msk.msra.mxu0 %vm146_vm0, %v43_v20  ;;  %v89_v31 = vld [vmem:[%s2430_s0 + $0x1c0] sm:$0xff]  ;;  %v40_v32 = vld [vmem:[%s2430_s0 + $0x38] sm:$0xff]  ;;  %v110_v37 = vld [vmem:[%s2432_s2 + $0x30] sm:$0x3] }
  0x17   :  { %1336 = vmatpush.xpose.msk.msra.mxu1 %vm146_vm0, %v59_v21  ;;  %v56_v33 = vld [vmem:[%s2430_s0 + $0xb8] sm:$0xff]  ;;  %v39_v38 = vld [vmem:[%s2430_s0 + $0x30] sm:$0xff]  ;;  %143 = vperm.xlu0 %1494, %v110_v37   ;;  %v38_v42 = vld [vmem:[%s2430_s0 + $0x28] sm:$0xff] }
  0x18   :  { %1359 = vmatpush.xpose.msk.msra.mxu2 %vm146_vm0, %v75_v22  ;;  %v72_v34 = vld [vmem:[%s2430_s0 + $0x138] sm:$0xff]  ;;  %v55_v39 = vld [vmem:[%s2430_s0 + $0xb0] sm:$0xff]  ;;  %v54_v43 = vld [vmem:[%s2430_s0 + $0xa8] sm:$0xff] }
  0x19   :  { %1382 = vmatpush.xpose.msk.msra.mxu3 %vm146_vm0, %v91_v23  ;;  %v88_v35 = vld [vmem:[%s2430_s0 + $0x1b8] sm:$0xff]  ;;  %v71_v40 = vld [vmem:[%s2430_s0 + $0x130] sm:$0xff]  ;;  %v70_v44 = vld [vmem:[%s2430_s0 + $0x128] sm:$0xff] }
  0x1a   :  { %1314 = vmatpush.xpose.msk.msra.mxu0 %vm146_vm0, %v42_v24  ;;  %v87_v41 = vld [vmem:[%s2430_s0 + $0x1b0] sm:$0xff]  ;;  %v86_v45 = vld [vmem:[%s2430_s0 + $0x1a8] sm:$0xff]  ;;  %v37_v47 = vld [vmem:[%s2430_s0 + $0x20] sm:$0xff] }
  0x1b   :  { %1337 = vmatpush.xpose.msk.msra.mxu1 %vm146_vm0, %v58_v25  ;;  %v109_v46 = vld [vmem:[%s2432_s2 + $0x28] sm:$0xff]  ;;  %v53_v48 = vld [vmem:[%s2430_s0 + $0xa0] sm:$0xff]  ;;  %v36_v51 = vld [vmem:[%s2430_s0 + $0x18] sm:$0xff] }
  0x1c   :  { %1360 = vmatpush.xpose.msk.msra.mxu2 %vm146_vm0, %v74_v26  ;;  %v69_v49 = vld [vmem:[%s2430_s0 + $0x120] sm:$0xff]  ;;  %v52_v52 = vld [vmem:[%s2430_s0 + $0x98] sm:$0xff]  ;;  %v35_v56 = vld [vmem:[%s2430_s0 + $0x10] sm:$0xff] }
  0x1d   :  { %1383 = vmatpush.xpose.msk.msra.mxu3 %vm146_vm0, %v90_v27  ;;  %v85_v50 = vld [vmem:[%s2430_s0 + $0x1a0] sm:$0xff]  ;;  %v68_v53 = vld [vmem:[%s2430_s0 + $0x118] sm:$0xff]  ;;  %v51_v57 = vld [vmem:[%s2430_s0 + $0x90] sm:$0xff] }
  0x1e   :  { %1315 = vmatpush.xpose.msk.msra.mxu0 %vm146_vm0, %v41_v28  ;;  %v84_v54 = vld [vmem:[%s2430_s0 + $0x198] sm:$0xff]  ;;  %v104_v55 = vld [vmem:[%s2432_s2] sm:$0xff]  ;;  %v67_v58 = vld [vmem:[%s2430_s0 + $0x110] sm:$0xff] }
  0x1f   :  { %1338 = vmatpush.xpose.msk.msra.mxu1 %vm146_vm0, %v57_v29  ;;  %138 = vperm.xlu0 %1494, %v109_v46   ;;  %v83_v59 = vld [vmem:[%s2430_s0 + $0x190] sm:$0xff]  ;;  %v34_v60 = vld [vmem:[%s2430_s0 + $0x8] sm:$0xff]  ;;  %v33_v0 = vld [vmem:[%s2430_s0] sm:$0xff] }
  0x20   :  { %1361 = vmatpush.xpose.msk.msra.mxu2 %vm146_vm0, %v73_v30  ;;  %v50_v61 = vld [vmem:[%s2430_s0 + $0x88] sm:$0xff]  ;;  %v49_v1 = vld [vmem:[%s2430_s0 + $0x80] sm:$0xff]  ;;  %v107_v7 = vld [vmem:[%s2432_s2 + $0x18] sm:$0xff] }
  0x21   :  { %1384 = vmatpush.xpose.msk.msra.mxu3 %vm146_vm0, %v89_v31  ;;  %v66_v62 = vld [vmem:[%s2430_s0 + $0x108] sm:$0xff]  ;;  %v65_v2 = vld [vmem:[%s2430_s0 + $0x100] sm:$0xff]  ;;  %v106_v8 = vld [vmem:[%s2432_s2 + $0x10] sm:$0xff] }
  0x22   :  { %1316 = vmatpush.xpose.msk.msra.mxu0 %vm146_vm0, %v40_v32  ;;  %v82_v63 = vld [vmem:[%s2430_s0 + $0x188] sm:$0xff]  ;;  %v81_v3 = vld [vmem:[%s2430_s0 + $0x180] sm:$0xff]  ;;  %123 = vperm.xlu2 %1496, %v106_v8   ;;  %v99_v9 = vld [vmem:[%s2431_s1 + $0x10] sm:$0xff] }
  0x23   :  { %1339 = vmatpush.xpose.msk.msra.mxu1 %vm146_vm0, %v56_v33  ;;  %v97_v4 = vld [vmem:[%s2431_s1] sm:$0xff]  ;;  %v98_v6 = vld [vmem:[%s2431_s1 + $0x8] sm:$0xff]  ;;  %v715_v10 = vld [vmem:[%s2434_s4 + $0x18] sm:$0x1] }
  0x24   :  { %1362 = vmatpush.xpose.msk.msra.mxu2 %vm146_vm0, %v72_v34  ;;  %v108_v5 = vld [vmem:[%s2432_s2 + $0x20] sm:$0xff]  ;;  %v105_v11 = vld [vmem:[%s2432_s2 + $0x8] sm:$0xff]  ;;  %v100_v13 = vld [vmem:[%s2431_s1 + $0x18] sm:$0xff]  ;;  %s1299_s2 = sshll.u32 %s2439_s9, 4  ;;  %s1300_s2 = int_to_ptr.hbm [resolvable:$true] %s1299_s2 }
  0x25   :  { %1385 = vmatpush.xpose.msk.msra.mxu3 %vm146_vm0, %v88_v35  ;;  %133 = vperm.xlu1 %1495, %v108_v5   ;;  %v713_v12 = vld [vmem:[%s2434_s4 + $0x8] sm:$0xff]  ;;  %v992_v14 = vld [vmem:[%s2436_s6] sm:$0xff]  ;;  %v714_v15 = vld [vmem:[%s2434_s4 + $0x10] sm:$0xff] }
  0x26   :  { %1317 = vmatpush.xpose.msk.msra.mxu0 %vm146_vm0, %v39_v38  ;;  %v712_v16 = vld [vmem:[%s2434_s4] sm:$0xff]  ;;  %v993_v18 = vld [vmem:[%s2436_s6 + $0x8] sm:$0xf]  ;;  %v103_v21 = vld [vmem:[%s2431_s1 + $0x30] sm:$0x3] }
  0x27   :  { %1340 = vmatpush.xpose.msk.msra.mxu1 %vm146_vm0, %v55_v39  ;;  %113 = vperm.xlu0 %1494, %v104_v55   ;;  %v101_v17 = vld [vmem:[%s2431_s1 + $0x20] sm:$0xff]  ;;  %v102_v20 = vld [vmem:[%s2431_s1 + $0x28] sm:$0xff] }
  0x28   :  { %1363 = vmatpush.xpose.msk.msra.mxu2 %vm146_vm0, %v71_v40  ;;  %v1173_v19 = vld [vmem:[%s2438_s8] sm:$0xf] }
  0x29   :  { %1386 = vmatpush.xpose.msk.msra.mxu3 %vm146_vm0, %v87_v41 }
  0x2a   :  { %1318 = vmatpush.xpose.msk.msra.mxu0 %vm146_vm0, %v38_v42  ;;  %118 = vperm.xlu2 %1496, %v105_v11  }
  0x2b   :  { %1341 = vmatpush.xpose.msk.msra.mxu1 %vm146_vm0, %v54_v43 }
  0x2c   :  { %1364 = vmatpush.xpose.msk.msra.mxu2 %vm146_vm0, %v70_v44 }
  0x2d   :  { %1387 = vmatpush.xpose.msk.msra.mxu3 %vm146_vm0, %v86_v45  ;;  %128 = vperm.xlu1 %1495, %v107_v7  }
  0x2e   :  { %1319 = vmatpush.xpose.msk.msra.mxu0 %vm146_vm0, %v37_v47 }
  0x2f   :  { %1342 = vmatpush.xpose.msk.msra.mxu1 %vm146_vm0, %v53_v48  ;;  %723 = vperm.xlu0 %1494, %v713_v12  }
  0x30   :  { %1365 = vmatpush.xpose.msk.msra.mxu2 %vm146_vm0, %v69_v49 }
  0x31   :  { %1388 = vmatpush.xpose.msk.msra.mxu3 %vm146_vm0, %v85_v50 }
  0x32   :  { %1320 = vmatpush.xpose.msk.msra.mxu0 %vm146_vm0, %v36_v51  ;;  %728 = vperm.xlu2 %1496, %v714_v15  }
  0x33   :  { %1343 = vmatpush.xpose.msk.msra.mxu1 %vm146_vm0, %v52_v52 }
  0x34   :  { %1366 = vmatpush.xpose.msk.msra.mxu2 %vm146_vm0, %v68_v53 }
  0x35   :  { %1389 = vmatpush.xpose.msk.msra.mxu3 %vm146_vm0, %v84_v54  ;;  %733 = vperm.xlu1 %1495, %v715_v10  }
  0x36   :  { %1321 = vmatpush.xpose.msk.msra.mxu0 %vm146_vm0, %v35_v56 }
  0x37   :  { %1344 = vmatpush.xpose.msk.msra.mxu1 %vm146_vm0, %v51_v57  ;;  %996 = vperm.xlu0 %1494, %v992_v14  }
  0x38   :  { %1367 = vmatpush.xpose.msk.msra.mxu2 %vm146_vm0, %v67_v58 }
  0x39   :  { %1390 = vmatpush.xpose.msk.msra.mxu3 %vm146_vm0, %v83_v59 }
  0x3a   :  { %1322 = vmatpush.xpose.msk.msra.mxu0 %vm146_vm0, %v34_v60  ;;  %1001 = vperm.xlu2 %1496, %v993_v18  }
  0x3b   :  { %1345 = vmatpush.xpose.msk.msra.mxu1 %vm146_vm0, %v50_v61 }
  0x3c   :  { %1368 = vmatpush.xpose.msk.msra.mxu2 %vm146_vm0, %v66_v62 }
  0x3d   :  { %1391 = vmatpush.xpose.msk.msra.mxu3 %vm146_vm0, %v82_v63  ;;  %718 = vperm.xlu1 %1495, %v712_v16  }
  0x3e   :  { %1323 = vmatpush.xpose.msk.msra.mxu0 %vm146_vm0, %v33_v0 }
  0x3f   :  { %1346 = vmatpush.xpose.msk.msra.mxu1 %vm146_vm0, %v49_v1 }
  0x40   :  { %1369 = vmatpush.xpose.msk.msra.mxu2 %vm146_vm0, %v65_v2 }
  0x41   :  { %1392 = vmatpush.xpose.msk.msra.mxu3 %vm146_vm0, %v81_v3  ;;  %1324 = vmatmul.msk.f32.vlgmr.msra.gmra.mxu0 %vm146_vm0, %v97_v4 }
  0x42   :  { %1347 = vmatmul.msk.f32.vlgmr.msra.gmra.mxu1 %vm146_vm0, %v97_v4 }
  0x43   :  { %1370 = vmatmul.msk.f32.vlgmr.msra.gmra.mxu2 %vm146_vm0, %v97_v4 }
  0x44   :  { %1393 = vmatmul.msk.f32.vlgmr.msra.gmra.mxu3 %vm146_vm0, %v97_v4 }
  0x45   :  { %1176 = vperm.xlu1 %1495, %v1173_v19  }
  0x49   :  { %1325 = vmatmul.msk.f32.gmra.mxu0 %vm146_vm0, %v98_v6 }
  0x4a   :  { %1348 = vmatmul.msk.f32.gmra.mxu1 %vm146_vm0, %v98_v6 }
  0x4b   :  { %1371 = vmatmul.msk.f32.gmra.mxu2 %vm146_vm0, %v98_v6 }
  0x4c   :  { %1394 = vmatmul.msk.f32.gmra.mxu3 %vm146_vm0, %v98_v6 }
  0x51   :  { %1326 = vmatmul.msk.f32.gmra.mxu0 %vm146_vm0, %v99_v9 }
  0x52   :  { %1349 = vmatmul.msk.f32.gmra.mxu1 %vm146_vm0, %v99_v9 }
  0x53   :  { %1372 = vmatmul.msk.f32.gmra.mxu2 %vm146_vm0, %v99_v9 }
  0x54   :  { %1395 = vmatmul.msk.f32.gmra.mxu3 %vm146_vm0, %v99_v9 }
  0x59   :  { %1327 = vmatmul.msk.f32.gmra.mxu0 %vm146_vm0, %v100_v13 }
  0x5a   :  { %1350 = vmatmul.msk.f32.gmra.mxu1 %vm146_vm0, %v100_v13 }
  0x5b   :  { %1373 = vmatmul.msk.f32.gmra.mxu2 %vm146_vm0, %v100_v13 }
  0x5c   :  { %1396 = vmatmul.msk.f32.gmra.mxu3 %vm146_vm0, %v100_v13 }
  0x61   :  { %1328 = vmatmul.msk.f32.gmra.mxu0 %vm146_vm0, %v101_v17 }
  0x62   :  { %1351 = vmatmul.msk.f32.gmra.mxu1 %vm146_vm0, %v101_v17 }
  0x63   :  { %1374 = vmatmul.msk.f32.gmra.mxu2 %vm146_vm0, %v101_v17 }
  0x64   :  { %1397 = vmatmul.msk.f32.gmra.mxu3 %vm146_vm0, %v101_v17 }
  0x69   :  { %1329 = vmatmul.msk.f32.gmra.mxu0 %vm146_vm0, %v102_v20 }
  0x6a   :  { %1352 = vmatmul.msk.f32.gmra.mxu1 %vm146_vm0, %v102_v20 }
  0x6b   :  { %1375 = vmatmul.msk.f32.gmra.mxu2 %vm146_vm0, %v102_v20 }
  0x6c   :  { %1398 = vmatmul.msk.f32.gmra.mxu3 %vm146_vm0, %v102_v20 }
  0x71   :  { %1330 = vmatmul.msk.f32.gmra.mxu0 %vm146_vm0, %v103_v21 }
  0x72   :  { %1353 = vmatmul.msk.f32.gmra.mxu1 %vm146_vm0, %v103_v21 }
  0x73   :  { %1376 = vmatmul.msk.f32.gmra.mxu2 %vm146_vm0, %v103_v21 }
  0x74   :  { %1399 = vmatmul.msk.f32.gmra.mxu3 %vm146_vm0, %v103_v21 }
  0x7c   :  { %v2038_v26 = vpop.permute.xlu2 %123 }
  0x84   :  { %v119_v39 = vpop.permute.xlu2 %118 }
  0x89   :  { %v2034_v22 = vpop.permute.xlu0 %143 }
  0x91   :  { %v2036_v25 = vpop.permute.xlu0 %138 }
  0x97   :  { %v2048_v42 = vpop.permute.xlu1 %133 }
  0x99   :  { %v114_v31 = vpop.permute.xlu0 %113 }
  0x9f   :  { %v2065_v57 = vpop.permute.xlu1 %128 }
  0xbe   :  { %v377_v23 = vpop.f32.mrf.mxu0 }
  0xbf   :  { %v415_v24 = vpop.f32.mrf.mxu1  ;;  %v2040_v32 = vadd.f32 %v377_v23, %v114_v31 }
  0xc0   :  { %v2042_v33 = vadd.f32 %v415_v24, %v114_v31 }
  0xc1   :  { %v540_v38 = vmul.f32 1.442695, %v2040_v32  ;;  %vm512_vm1 = vcmp.gt.f32.partialorder %v2040_v32, 0.0 }
  0xc2   :  { %v542_v41 = vmul.f32 1.442695, %v2042_v33  ;;  %vm513_vm2 = vcmp.gt.f32.partialorder %v2042_v33, 0.0 }
  0xc3   :  { %1497 = vpow2.f32 %v540_v38 }
  0xc4   :  { %1499 = vpow2.f32 %v542_v41 }
  0xc6   :  { %v453_v27 = vpop.f32.mrf.mxu2  ;;  %v380_v29 = vpop.f32.mrf.mxu0 }
  0xc7   :  { %v491_v28 = vpop.f32.mrf.mxu3  ;;  %v418_v30 = vpop.f32.mrf.mxu1  ;;  %v2045_v40 = vadd.f32 %v380_v29, %v119_v39  ;;  %v2053_v45 = vadd.f32 %v453_v27, %v114_v31 }
  0xc8   :  { %v2050_v43 = vadd.f32 %v418_v30, %v119_v39  ;;  %v2060_v55 = vadd.f32 %v491_v28, %v114_v31 }
  0xc9   :  { %v548_v44 = vmul.f32 1.442695, %v2045_v40  ;;  %v1498_v51 = vpop.eup %1497  ;;  %v544_v53 = vmul.f32 1.442695, %v2053_v45  ;;  %vm516_vm3 = vcmp.gt.f32.partialorder %v2045_v40, 0.0 }
  0xca   :  { %v550_v50 = vmul.f32 1.442695, %v2050_v43  ;;  %v1500_v54 = vpop.eup %1499  ;;  %v1400_v58 = vadd.f32 -1.0, %v1498_v51  ;;  %v546_v1 = vmul.f32 1.442695, %v2060_v55  ;;  %vm517_vm4 = vcmp.gt.f32.partialorder %v2050_v43, 0.0 }
  0xcb   :  { %1501 = vpow2.f32 %v548_v44  ;;  %v1401_v63 = vadd.f32 -1.0, %v1500_v54 }
  0xcc   :  { %1503 = vpow2.f32 %v550_v50  ;;  %v624_v7 = vmul.f32 1.6732632, %v1400_v58 }
  0xcd   :  { %1505 = vpow2.f32 %v544_v53  ;;  %v625_v13 = vmul.f32 1.6732632, %v1401_v63 }
  0xce   :  { %v456_v34 = vpop.f32.mrf.mxu2  ;;  %v383_v36 = vpop.f32.mrf.mxu0  ;;  %v652_v19 = vsel %vm512_vm1, %v2040_v32, %v624_v7 }
  0xcf   :  { %v494_v35 = vpop.f32.mrf.mxu3  ;;  %v421_v37 = vpop.f32.mrf.mxu1  ;;  %v2057_v52 = vadd.f32 %v383_v36, %v2038_v26  ;;  %v2074_v2 = vadd.f32 %v456_v34, %v119_v39  ;;  %v653_v30 = vsel %vm513_vm2, %v2042_v33, %v625_v13  ;;  %v2113_v36 = vmul.f32 1.050701, %v652_v19 }
  0xd0   :  { %v2063_v56 = vadd.f32 %v421_v37, %v2038_v26  ;;  %v2076_v5 = vadd.f32 %v494_v35, %v119_v39 }
  0xd1   :  { %v556_v59 = vmul.f32 1.442695, %v2057_v52  ;;  %v1502_v0 = vpop.eup %1501  ;;  %v552_v14 = vmul.f32 1.442695, %v2074_v2  ;;  %vm520_vm5 = vcmp.gt.f32.partialorder %v2057_v52, 0.0 }
  0xd2   :  { %v558_v6 = vmul.f32 1.442695, %v2063_v56  ;;  %v1504_v10 = vpop.eup %1503  ;;  %v1404_v12 = vadd.f32 -1.0, %v1502_v0  ;;  %v554_v17 = vmul.f32 1.442695, %v2076_v5  ;;  %vm521_vm6 = vcmp.gt.f32.partialorder %v2063_v56, 0.0 }
  0xd3   :  { %1507 = vpow2.f32 %v556_v59  ;;  %v1506_v16 = vpop.eup %1505  ;;  %v1405_v23 = vadd.f32 -1.0, %v1504_v10 }
  0xd4   :  { %1509 = vpow2.f32 %v546_v1  ;;  %v1402_v37 = vadd.f32 -1.0, %v1506_v16 }
  0xd5   :  { %1511 = vpow2.f32 %v558_v6 }
  0xd6   :  { %v459_v46 = vpop.f32.mrf.mxu2  ;;  %v386_v48 = vpop.f32.mrf.mxu0  ;;  %v2133_v59 = vmul.f32 1.6732632, %v1402_v37 }
  0xd7   :  { %v497_v47 = vpop.f32.mrf.mxu3  ;;  %v424_v49 = vpop.f32.mrf.mxu1  ;;  %v2069_v60 = vadd.f32 %v386_v48, %v2065_v57  ;;  %v2081_v8 = vadd.f32 %v459_v46, %v2038_v26  ;;  %v629_v46 = vmul.f32 1.6732632, %v1405_v23 }
  0xd8   :  { %v2096_v18 = vadd.f32 %v497_v47, %v2038_v26  ;;  %v2103_v21 = vadd.f32 %v424_v49, %v2065_v57  ;;  %v628_v26 = vmul.f32 1.6732632, %v1404_v12  ;;  %v2123_v47 = vmul.f32 1.050701, %v653_v30 }
  0xd9   :  { %v564_v9 = vmul.f32 1.442695, %v2069_v60  ;;  %v560_v20 = vmul.f32 1.442695, %v2081_v8  ;;  %v1508_v31 = vpop.eup %1507  ;;  %vm524_vm7 = vcmp.gt.f32.partialorder %v2069_v60, 0.0 }
  0xda   :  { %v562_v38 = vmul.f32 1.442695, %v2096_v18  ;;  %v1510_v44 = vpop.eup %1509  ;;  %v566_v33 = vmul.f32 1.442695, %v2103_v21  ;;  %v1408_v50 = vadd.f32 -1.0, %v1508_v31  ;;  %v656_v51 = vsel %vm516_vm3, %v2045_v40, %v628_v26 }
  0xdb   :  { %1513 = vpow2.f32 %v564_v9  ;;  %v1512_v48 = vpop.eup %1511  ;;  %v2137_v1 = vmul.f32 1.050701, %v656_v51  ;;  %v2142_v40 = vsel %vm517_vm4, %v2050_v43, %v629_v46  ;;  %vm525_vm10 = vcmp.gt.f32.partialorder %v2103_v21, 0.0 }
  0xdc   :  { %1515 = vpow2.f32 %v552_v14  ;;  %v1409_v0 = vadd.f32 -1.0, %v1512_v48  ;;  %v632_v9 = vmul.f32 1.6732632, %v1408_v50 }
  0xdd   :  { %1517 = vpow2.f32 %v554_v17 }
  0xde   :  { %v462_v61 = vpop.f32.mrf.mxu2  ;;  %v389_v3 = vpop.f32.mrf.mxu0  ;;  %1519 = vpow2.f32 %v560_v20  ;;  %v633_v30 = vmul.f32 1.6732632, %v1409_v0 }
  0xdf   :  { %v2071_v62 = vpop.f32.mrf.mxu3  ;;  %v427_v4 = vpop.f32.mrf.mxu1  ;;  %v2086_v11 = vadd.f32 %v389_v3, %v2048_v42  ;;  %v2106_v24 = vadd.f32 %v462_v61, %v2065_v57  ;;  %v2135_v61 = vadd.f32 -1.0, %v1510_v44 }
  0xe0   :  { %v2091_v15 = vadd.f32 %v427_v4, %v2048_v42  ;;  %v2186_v50 = vsel %vm521_vm6, %v2063_v56, %v633_v30 }
  0xe1   :  { %v572_v27 = vmul.f32 1.442695, %v2086_v11  ;;  %v568_v49 = vmul.f32 1.442695, %v2106_v24  ;;  %v1514_v53 = vpop.eup %1513  ;;  %vm528_vm8 = vcmp.gt.f32.partialorder %v2086_v11, 0.0  ;;  %vm526_vm0 = vcmp.gt.f32.partialorder %v2106_v24, 0.0 }
  0xe2   :  { %v574_v32 = vmul.f32 1.442695, %v2091_v15  ;;  %v1516_v63 = vpop.eup %1515  ;;  %v1412_v7 = vadd.f32 -1.0, %v1514_v53  ;;  %vm529_vm9 = vcmp.gt.f32.partialorder %v2091_v15, 0.0 }
  0xe3   :  { %1521 = vpow2.f32 %v572_v27  ;;  %v1518_v3 = vpop.eup %1517 }
  0xe4   :  { %1523 = vpow2.f32 %v574_v32  ;;  %v1520_v10 = vpop.eup %1519  ;;  %v660_v32 = vsel %vm520_vm5, %v2057_v52, %v632_v9  ;;  %v2177_v37 = vadd.f32 -1.0, %v1518_v3  ;;  %v636_v46 = vmul.f32 1.6732632, %v1412_v7 }
  0xe5   :  { %1525 = vpow2.f32 %v562_v38  ;;  %v2181_v52 = vmul.f32 1.050701, %v660_v32 }
  0xe6   :  { %v465_v28 = vpop.f32.mrf.mxu2  ;;  %v392_v34 = vpop.f32.mrf.mxu0  ;;  %1527 = vpow2.f32 %v566_v33 }
  0xe7   :  { %v503_v29 = vpop.f32.mrf.mxu3  ;;  %v430_v35 = vpop.f32.mrf.mxu1  ;;  %v2117_v39 = vadd.f32 %v392_v34, %v2036_v25  ;;  %1529 = vpow2.f32 %v568_v49  ;;  %v2146_v12 = vadd.f32 %v465_v28, %v2048_v42  ;;  %v2165_v28 = vadd.f32 %v2071_v62, %v2065_v57 }
  0xe8   :  { %v2120_v41 = vadd.f32 %v430_v35, %v2036_v25  ;;  %v2155_v19 = vadd.f32 %v503_v29, %v2048_v42  ;;  %v2174_v34 = vadd.f32 -1.0, %v1516_v63 }
  0xe9   :  { %v580_v54 = vmul.f32 1.442695, %v2117_v39  ;;  %v1522_v17 = vpop.eup %1521  ;;  %v576_v57 = vmul.f32 1.442695, %v2146_v12  ;;  %v570_v49 = vmul.f32 1.442695, %v2165_v28 }
  0xea   :  { %v582_v58 = vmul.f32 1.442695, %v2120_v41  ;;  %v1524_v27 = vpop.eup %1523  ;;  %v1416_v62 = vadd.f32 -1.0, %v1522_v17  ;;  %v578_v44 = vmul.f32 1.442695, %v2155_v19  ;;  %vm532_vm12 = vcmp.gt.f32.partialorder %v2117_v39, 0.0 }
  0xeb   :  { %1531 = vpow2.f32 %v580_v54  ;;  %v1526_v31 = vpop.eup %1525  ;;  %v1417_v33 = vadd.f32 -1.0, %v1524_v27  ;;  %vm533_vm13 = vcmp.gt.f32.partialorder %v2120_v41, 0.0  ;;  %vm530_vm1 = vcmp.gt.f32.partialorder %v2146_v12, 0.0 }
  0xec   :  { %1533 = vpow2.f32 %v582_v58  ;;  %v1528_v35 = vpop.eup %1527  ;;  %v640_v3 = vmul.f32 1.6732632, %v1416_v62  ;;  %vm531_vm6 = vcmp.gt.f32.partialorder %v2155_v19, 0.0 }
  0xed   :  { %v1530_v38 = vpop.eup %1529  ;;  %v1413_v58 = vadd.f32 -1.0, %v1528_v35 }
  0xee   :  { %v468_v4 = vpop.f32.mrf.mxu2  ;;  %v395_v43 = vpop.f32.mrf.mxu0  ;;  %v1414_v17 = vadd.f32 -1.0, %v1530_v38 }
  0xef   :  { %v506_v6 = vpop.f32.mrf.mxu3  ;;  %v2149_v13 = vadd.f32 %v468_v4, %v2036_v25  ;;  %v433_v16 = vpop.f32.mrf.mxu1  ;;  %v2158_v20 = vadd.f32 %v395_v43, %v2034_v22  ;;  %v641_v4 = vmul.f32 1.6732632, %v1417_v33 }
  0xf0   :  { %v2152_v14 = vadd.f32 %v506_v6, %v2036_v25  ;;  %v2161_v23 = vadd.f32 %v433_v16, %v2034_v22  ;;  %v664_v6 = vsel %vm524_vm7, %v2069_v60, %v636_v46  ;;  %v668_v60 = vsel %vm528_vm8, %v2086_v11, %v640_v3 }
  0xf1   :  { %v584_v25 = vmul.f32 1.442695, %v2149_v13  ;;  %v588_v42 = vmul.f32 1.442695, %v2158_v20  ;;  %v1532_v48 = vpop.eup %1531  ;;  %v2209_v30 = vmul.f32 1.050701, %v664_v6 }
  0xf2   :  { %v586_v26 = vmul.f32 1.442695, %v2152_v14  ;;  %v590_v29 = vmul.f32 1.442695, %v2161_v23  ;;  %v1534_v51 = vpop.eup %1533  ;;  %v1420_v56 = vadd.f32 -1.0, %v1532_v48  ;;  %vm536_vm14 = vcmp.gt.f32.partialorder %v2158_v20, 0.0 }
  0xf3   :  { %1535 = vpow2.f32 %v584_v25  ;;  %v1421_v16 = vadd.f32 -1.0, %v1534_v51  ;;  %v2204_v25 = vadd.f32 -1.0, %v1526_v31  ;;  %v669_v31 = vsel %vm529_vm9, %v2091_v15, %v641_v4 }
  0xf4   :  { %1537 = vpow2.f32 %v586_v26  ;;  %v644_v35 = vmul.f32 1.6732632, %v1420_v56  ;;  %v2215_v38 = vmul.f32 1.6732632, %v1414_v17  ;;  %v696_v33 = vmul.f32 1.050701, %v668_v60 }
  0xf5   :  { %1539 = vpow2.f32 %v588_v42  ;;  %v637_v42 = vmul.f32 1.6732632, %v1413_v58  ;;  %v645_v62 = vmul.f32 1.6732632, %v1421_v16  ;;  %vm537_vm15 = vcmp.gt.f32.partialorder %v2161_v23, 0.0 }
  0xf6   :  { %1541 = vpow2.f32 %v590_v29  ;;  %v471_v53 = vpop.f32.mrf.mxu2  ;;  %v672_v15 = vsel %vm532_vm12, %v2117_v39, %v644_v35  ;;  %vm534_vm3 = vcmp.gt.f32.partialorder %v2149_v13, 0.0  ;;  %vm535_vm5 = vcmp.gt.f32.partialorder %v2152_v14, 0.0 }
  0xf7   :  { %v509_v54 = vpop.f32.mrf.mxu3  ;;  %1543 = vpow2.f32 %v576_v57  ;;  %v2191_v63 = vadd.f32 %v471_v53, %v2034_v22  ;;  %v673_v6 = vsel %vm533_vm13, %v2120_v41, %v645_v62  ;;  %v700_v39 = vmul.f32 1.050701, %v672_v15 }
  0xf8   :  { %v2194_v0 = vadd.f32 %v509_v54, %v2034_v22  ;;  %1545 = vpow2.f32 %v578_v44  ;;  %v2202_v22 = vadd.f32 -1.0, %v1520_v10  ;;  %v697_v54 = vmul.f32 1.050701, %v669_v31 }
  0xf9   :  { %v1536_v7 = vpop.eup %1535  ;;  %v592_v9 = vmul.f32 1.442695, %v2191_v63  ;;  %1547 = vpow2.f32 %v570_v49  ;;  %v665_v41 = vsel %vm525_vm10, %v2103_v21, %v637_v42  ;;  %vm538_vm2 = vcmp.gt.f32.partialorder %v2191_v63, 0.0 }
  0xfa   :  { %v594_v43 = vmul.f32 1.442695, %v2194_v0  ;;  %v1538_v27 = vpop.eup %1537  ;;  %v1422_v46 = vadd.f32 -1.0, %v1536_v7  ;;  %vm539_vm4 = vcmp.gt.f32.partialorder %v2194_v0, 0.0  ;;  %vm527_vm7 = vcmp.gt.f32.partialorder %v2165_v28, 0.0 }
  0xfb   :  { %v1540_v26 = vpop.eup %1539  ;;  %1549 = vpow2.f32 %v592_v9  ;;  %v1423_v49 = vadd.f32 -1.0, %v1538_v27  ;;  %vm522_vm8 = vcmp.gt.f32.partialorder %v2081_v8, 0.0  ;;  %vm523_vm9 = vcmp.gt.f32.partialorder %v2096_v18, 0.0 }
  0xfc   :  { %v1542_v29 = vpop.eup %1541  ;;  %v1424_v32 = vadd.f32 -1.0, %v1540_v26  ;;  %1551 = vpow2.f32 %v594_v43  ;;  %v646_v17 = vmul.f32 1.6732632, %v1422_v46  ;;  %vm736_vm10 = vcmask 408576  }
  0xfd   :  { %v1544_v57 = vpop.eup %1543  ;;  %v1425_v10 = vadd.f32 -1.0, %v1542_v29  ;;  %v647_v27 = vmul.f32 1.6732632, %v1423_v49  ;;  %vm519_vm12 = vcmp.gt.f32.partialorder %v2076_v5, 0.0  ;;  %vm514_vm13 = vcmp.gt.f32.partialorder %v2053_v45, 0.0 }
  0xfe   :  { %v1546_v44 = vpop.eup %1545  ;;  %v648_v11 = vmul.f32 1.6732632, %v1424_v32  ;;  %v1418_v58 = vadd.f32 -1.0, %v1544_v57 }
  0xff   :  { %v649_v48 = vmul.f32 1.6732632, %v1425_v10  ;;  %v1548_v51 = vpop.eup %1547  ;;  %v1419_v7 = vadd.f32 -1.0, %v1546_v44  ;;  %v674_v10 = vsel %vm534_vm3, %v2149_v13, %v646_v17  ;;  %v675_v42 = vsel %vm535_vm5, %v2152_v14, %v647_v27  ;;  %v729_v17 = vpop.permute.xlu2 %728 }
 0x100   :  { %v676_v53 = vsel %vm536_vm14, %v2158_v20, %v648_v11  ;;  %v1415_v26 = vadd.f32 -1.0, %v1548_v51  ;;  %v642_v29 = vmul.f32 1.6732632, %v1418_v58  ;;  %v693_v44 = vmul.f32 1.050701, %v665_v41 }
 0x101   :  { %v1550_v3 = vpop.eup %1549  ;;  %v704_v56 = vmul.f32 1.050701, %v676_v53  ;;  %v677_v4 = vsel %vm537_vm15, %v2161_v23, %v649_v48  ;;  %v701_v23 = vmul.f32 1.050701, %v673_v6  ;;  %v643_v35 = vmul.f32 1.6732632, %v1419_v7 }
 0x102   :  { %v1552_v9 = vpop.eup %1551  ;;  %v1426_v43 = vadd.f32 -1.0, %v1550_v3  ;;  %v705_v16 = vmul.f32 1.050701, %v677_v4  ;;  %v639_v31 = vmul.f32 1.6732632, %v1415_v26  ;;  %v670_v46 = vsel %vm530_vm1, %v2146_v12, %v642_v29  ;;  %v709_v53 = vld [vmem:[%s2433_s3 + $0x8] sm:$0xff] }
 0x103   :  { %v1427_v20 = vadd.f32 -1.0, %v1552_v9  ;;  %1428 = vmatpush.msk.msrb.mxu0 %vm749_vm11, %v704_v56  ;;  %v702_v13 = vmul.f32 1.050701, %v674_v10  ;;  %v635_v14 = vmul.f32 1.6732632, %v2204_v25  ;;  %v666_v12 = vsel %vm526_vm0, %v2106_v24, %v2215_v38  ;;  %v724_v9 = vpop.permute.xlu0 %723 }
 0x104   :  { %v650_v60 = vmul.f32 1.6732632, %v1426_v43  ;;  %1433 = vmatpush.msk.msrb.mxu1 %vm749_vm11, %v705_v16  ;;  %v703_v48 = vmul.f32 1.050701, %v675_v42  ;;  %v630_v25 = vmul.f32 1.6732632, %v2174_v34 }
 0x105   :  { %v651_v32 = vmul.f32 1.6732632, %v1427_v20  ;;  %772 = vmatpush.msrb.mxu0 %v700_v39  ;;  %v694_v24 = vmul.f32 1.050701, %v666_v12  ;;  %v627_v34 = vmul.f32 1.6732632, %v2135_v61 }
 0x106   :  { %801 = vmatpush.msrb.mxu1 %v701_v23  ;;  %v678_v57 = vsel %vm538_vm2, %v2191_v63, %v650_v60  ;;  %v671_v63 = vsel %vm531_vm6, %v2155_v19, %v643_v35  ;;  %v698_v19 = vmul.f32 1.050701, %v670_v46  ;;  %vm515_vm14 = vcmp.gt.f32.partialorder %v2060_v55, 0.0 }
 0x107   :  { %773 = vmatpush.msrb.mxu0 %v696_v33  ;;  %v706_v62 = vmul.f32 1.050701, %v678_v57  ;;  %v679_v21 = vsel %vm539_vm4, %v2194_v0, %v651_v32  ;;  %v634_v0 = vmul.f32 1.6732632, %v2202_v22  ;;  %v689_v33 = vmul.f32 1.050701, %v2186_v50 }
 0x108   :  { %802 = vmatpush.msrb.mxu1 %v697_v54  ;;  %v707_v11 = vmul.f32 1.050701, %v679_v21  ;;  %v667_v22 = vsel %vm527_vm7, %v2165_v28, %v639_v31  ;;  %v685_v50 = vmul.f32 1.050701, %v2142_v40  ;;  %v699_v49 = vmul.f32 1.050701, %v671_v63  ;;  %v2307_v54 = vpop.permute.xlu1 %733 }
 0x109   :  { %774 = vmatpush.msrb.mxu0 %v2209_v30  ;;  %1438 = vmatpush.msk.msrb.mxu2 %vm749_vm11, %v706_v62  ;;  %v631_v30 = vmul.f32 1.6732632, %v2177_v37  ;;  %v663_v28 = vsel %vm523_vm9, %v2096_v18, %v635_v14  ;;  %v695_v37 = vmul.f32 1.050701, %v667_v22  ;;  %v708_v40 = vld [vmem:[%s2433_s3] sm:$0xff]  ;;  %vm1011_vm3 = vcmask 1040384  }
 0x10a   :  { %803 = vmatpush.msrb.mxu1 %v693_v44  ;;  %1443 = vmatpush.msk.msrb.mxu3 %vm749_vm11, %v707_v11  ;;  %vm518_vm11 = vcmp.gt.f32.partialorder %v2074_v2, 0.0 }
 0x10b   :  { %775 = vmatpush.msrb.mxu0 %v2181_v52  ;;  %830 = vmatpush.msrb.mxu2 %v702_v13  ;;  %v662_v52 = vsel %vm522_vm8, %v2081_v8, %v634_v0  ;;  %v658_v8 = vsel %vm518_vm11, %v2074_v2, %v630_v25  ;;  %v659_v18 = vsel %vm519_vm12, %v2076_v5, %v631_v30  ;;  %vm1004_vm8 = vcmask 203776  }
 0x10c   :  { %804 = vmatpush.msrb.mxu1 %v689_v33  ;;  %859 = vmatpush.msrb.mxu3 %v703_v48  ;;  %v690_v61 = vmul.f32 1.050701, %v662_v52  ;;  %v655_v2 = vsel %vm515_vm14, %v2060_v55, %v627_v34  ;;  %v686_v5 = vmul.f32 1.050701, %v658_v8  ;;  %v711_v55 = vld [vmem:[%s2433_s3 + $0x18] sm:$0x1] }
 0x10d   :  { %776 = vmatpush.msrb.mxu0 %v2137_v1  ;;  %831 = vmatpush.msrb.mxu2 %v698_v19  ;;  %v691_v1 = vmul.f32 1.050701, %v663_v28  ;;  %v683_v51 = vmul.f32 1.050701, %v655_v2 }
 0x10e   :  { %805 = vmatpush.msrb.mxu1 %v685_v50  ;;  %860 = vmatpush.msrb.mxu3 %v699_v49 }
 0x10f   :  { %777 = vmatpush.msrb.mxu0 %v2113_v36  ;;  %832 = vmatpush.msrb.mxu2 %v694_v24  ;;  %v654_v36 = vsel %vm514_vm13, %v2053_v45, %v2133_v59  ;;  %v710_v45 = vld [vmem:[%s2433_s3 + $0x10] sm:$0xff] }
 0x110   :  { %806 = vmatpush.msrb.mxu1 %v2123_v47  ;;  %861 = vmatpush.msrb.mxu3 %v695_v37  ;;  %v687_v47 = vmul.f32 1.050701, %v659_v18  ;;  %v682_v38 = vmul.f32 1.050701, %v654_v36  ;;  %v719_v56 = vpop.permute.xlu1 %718 }
 0x111   :  { %1429 = vmatmul.msk.f32.vlgmr.msrb.gmra.mxu0 %vm736_vm10, %v708_v40  ;;  %1434 = vmatmul.msk.f32.vlgmr.msrb.gmra.mxu1 %vm736_vm10, %v708_v40 }
 0x112   :  { %833 = vmatpush.msrb.mxu2 %v690_v61  ;;  %862 = vmatpush.msrb.mxu3 %v691_v1 }
 0x114   :  { %834 = vmatpush.msrb.mxu2 %v686_v5  ;;  %863 = vmatpush.msrb.mxu3 %v687_v47 }
 0x116   :  { %835 = vmatpush.msrb.mxu2 %v682_v38  ;;  %864 = vmatpush.msrb.mxu3 %v683_v51 }
 0x117   :  { %1439 = vmatmul.msk.f32.vlgmr.msrb.gmra.mxu2 %vm736_vm10, %v708_v40  ;;  %1444 = vmatmul.msk.f32.vlgmr.msrb.gmra.mxu3 %vm736_vm10, %v708_v40 }
 0x119   :  { %1430 = vmatmul.msk.f32.gmra.mxu0 %vm736_vm10, %v709_v53  ;;  %1435 = vmatmul.msk.f32.gmra.mxu1 %vm736_vm10, %v709_v53 }
 0x11f   :  { %1440 = vmatmul.msk.f32.gmra.mxu2 %vm736_vm10, %v709_v53  ;;  %1445 = vmatmul.msk.f32.gmra.mxu3 %vm736_vm10, %v709_v53 }
 0x121   :  { %1431 = vmatmul.msk.f32.gmra.mxu0 %vm736_vm10, %v710_v45  ;;  %1436 = vmatmul.msk.f32.gmra.mxu1 %vm736_vm10, %v710_v45 }
 0x127   :  { %1441 = vmatmul.msk.f32.gmra.mxu2 %vm736_vm10, %v710_v45  ;;  %1446 = vmatmul.msk.f32.gmra.mxu3 %vm736_vm10, %v710_v45 }
 0x129   :  { %1432 = vmatmul.msk.f32.gmra.mxu0 %vm736_vm10, %v711_v55  ;;  %1437 = vmatmul.msk.f32.gmra.mxu1 %vm736_vm10, %v711_v55 }
 0x12f   :  { %1442 = vmatmul.msk.f32.gmra.mxu2 %vm736_vm10, %v711_v55  ;;  %1447 = vmatmul.msk.f32.gmra.mxu3 %vm736_vm10, %v711_v55 }
 0x18e   :  { %v779_v59 = vpop.f32.mrf.mxu0  ;;  %v808_v15 = vpop.f32.mrf.mxu1 }
 0x18f   :  { %v2309_v4 = vadd.f32 %v779_v59, %v719_v56  ;;  %v2311_v43 = vadd.f32 %v808_v15, %v719_v56 }
 0x191   :  { %v894_v20 = vmul.f32 1.442695, %v2309_v4  ;;  %v896_v26 = vmul.f32 1.442695, %v2311_v43  ;;  %vm878_vm6 = vcmp.gt.f32.partialorder %v2309_v4, 0.0  ;;  %vm879_vm7 = vcmp.gt.f32.partialorder %v2311_v43, 0.0 }
 0x193   :  { %1553 = vpow2.f32 %v894_v20 }
 0x194   :  { %1555 = vpow2.f32 %v896_v26 }
 0x196   :  { %v782_v58 = vpop.f32.mrf.mxu0  ;;  %v811_v3 = vpop.f32.mrf.mxu1 }
 0x197   :  { %v2313_v16 = vadd.f32 %v782_v58, %v724_v9  ;;  %v2317_v60 = vadd.f32 %v811_v3, %v724_v9 }
 0x199   :  { %v902_v29 = vmul.f32 1.442695, %v2313_v16  ;;  %v904_v62 = vmul.f32 1.442695, %v2317_v60  ;;  %v1554_v13 = vpop.eup %1553  ;;  %vm882_vm15 = vcmp.gt.f32.partialorder %v2313_v16, 0.0  ;;  %vm883_vm5 = vcmp.gt.f32.partialorder %v2317_v60, 0.0 }
 0x19a   :  { %v837_v6 = vpop.f32.mrf.mxu2  ;;  %v866_v7 = vpop.f32.mrf.mxu3  ;;  %v1448_v37 = vadd.f32 -1.0, %v1554_v13 }
 0x19b   :  { %1557 = vpow2.f32 %v902_v29  ;;  %v2327_v21 = vadd.f32 %v837_v6, %v719_v56  ;;  %v2329_v44 = vadd.f32 %v866_v7, %v719_v56  ;;  %v1556_v0 = vpop.eup %1555 }
 0x19c   :  { %v1449_v40 = vadd.f32 -1.0, %v1556_v0  ;;  %v942_v38 = vmul.f32 1.6732632, %v1448_v37 }
 0x19d   :  { %v898_v48 = vmul.f32 1.442695, %v2327_v21  ;;  %v900_v30 = vmul.f32 1.442695, %v2329_v44 }
 0x19e   :  { %v785_v39 = vpop.f32.mrf.mxu0  ;;  %v814_v27 = vpop.f32.mrf.mxu1  ;;  %v943_v51 = vmul.f32 1.6732632, %v1449_v40 }
 0x19f   :  { %v2319_v23 = vadd.f32 %v785_v39, %v729_v17  ;;  %v2321_v41 = vadd.f32 %v814_v27, %v729_v17 }
 0x1a1   :  { %v910_v32 = vmul.f32 1.442695, %v2319_v23  ;;  %v912_v35 = vmul.f32 1.442695, %v2321_v41  ;;  %v1558_v33 = vpop.eup %1557  ;;  %vm886_vm0 = vcmp.gt.f32.partialorder %v2319_v23, 0.0  ;;  %vm887_vm1 = vcmp.gt.f32.partialorder %v2321_v41, 0.0 }
 0x1a2   :  { %v840_v57 = vpop.f32.mrf.mxu2  ;;  %v869_v10 = vpop.f32.mrf.mxu3  ;;  %v1452_v36 = vadd.f32 -1.0, %v1558_v33  ;;  %v958_v33 = vsel %vm878_vm6, %v2309_v4, %v942_v38  ;;  %vm1179_vm6 = vcmask 97280  }
 0x1a3   :  { %1559 = vpow2.f32 %v910_v32  ;;  %v2335_v63 = vadd.f32 %v840_v57, %v724_v9  ;;  %v2345_v28 = vadd.f32 %v869_v10, %v724_v9 }
 0x1a4   :  { %1561 = vpow2.f32 %v912_v35  ;;  %v946_v9 = vmul.f32 1.6732632, %v1452_v36 }
 0x1a5   :  { %1563 = vpow2.f32 %v904_v62  ;;  %v906_v52 = vmul.f32 1.442695, %v2335_v63  ;;  %v908_v5 = vmul.f32 1.442695, %v2345_v28  ;;  %vm884_vm9 = vcmp.gt.f32.partialorder %v2335_v63, 0.0 }
 0x1a6   :  { %v788_v42 = vpop.f32.mrf.mxu0  ;;  %v817_v31 = vpop.f32.mrf.mxu1  ;;  %v962_v13 = vsel %vm882_vm15, %v2313_v16, %v946_v9  ;;  %v959_v16 = vsel %vm879_vm7, %v2311_v43, %v943_v51  ;;  %vm885_vm14 = vcmp.gt.f32.partialorder %v2345_v28, 0.0  ;;  %vm880_vm15 = vcmp.gt.f32.partialorder %v2327_v21, 0.0 }
 0x1a7   :  { %v789_v11 = vadd.f32 %v788_v42, %v2307_v54  ;;  %v2333_v46 = vadd.f32 %v817_v31, %v2307_v54  ;;  %v975_v40 = vmul.f32 1.050701, %v959_v16 }
 0x1a9   :  { %v918_v14 = vmul.f32 1.442695, %v789_v11  ;;  %v920_v12 = vmul.f32 1.442695, %v2333_v46  ;;  %v1560_v25 = vpop.eup %1559  ;;  %vm890_vm2 = vcmp.gt.f32.partialorder %v789_v11, 0.0  ;;  %vm891_vm4 = vcmp.gt.f32.partialorder %v2333_v46, 0.0 }
 0x1aa   :  { %v843_v19 = vpop.f32.mrf.mxu2  ;;  %v872_v22 = vpop.f32.mrf.mxu3  ;;  %v1456_v18 = vadd.f32 -1.0, %v1560_v25 }
 0x1ab   :  { %1565 = vpow2.f32 %v918_v14  ;;  %v2340_v50 = vadd.f32 %v843_v19, %v729_v17  ;;  %v2342_v49 = vadd.f32 %v872_v22, %v729_v17  ;;  %v1562_v24 = vpop.eup %1561 }
 0x1ac   :  { %1567 = vpow2.f32 %v920_v12  ;;  %v1564_v34 = vpop.eup %1563  ;;  %v1457_v1 = vadd.f32 -1.0, %v1562_v24  ;;  %v950_v45 = vmul.f32 1.6732632, %v1456_v18  ;;  %v978_v12 = vmul.f32 1.050701, %v962_v13 }
 0x1ad   :  { %v914_v8 = vmul.f32 1.442695, %v2340_v50  ;;  %1569 = vpow2.f32 %v898_v48  ;;  %v916_v61 = vmul.f32 1.442695, %v2342_v49  ;;  %v1453_v2 = vadd.f32 -1.0, %v1564_v34 }
 0x1ae   :  { %1571 = vpow2.f32 %v900_v30  ;;  %v951_v58 = vmul.f32 1.6732632, %v1457_v1  ;;  %v974_v24 = vmul.f32 1.050701, %v958_v33  ;;  %vm888_vm10 = vcmp.gt.f32.partialorder %v2340_v50, 0.0 }
 0x1af   :  { %1573 = vpow2.f32 %v906_v52  ;;  %v947_v17 = vmul.f32 1.6732632, %v1453_v2  ;;  %v990_v52 = vld [vmem:[%s2435_s5] sm:$0xff]  ;;  %vm889_vm12 = vcmp.gt.f32.partialorder %v2342_v49, 0.0 }
 0x1b0   :  { %1575 = vpow2.f32 %v914_v8  ;;  %v967_v42 = vsel %vm887_vm1, %v2321_v41, %v951_v58 }
 0x1b1   :  { %v1566_v47 = vpop.eup %1565  ;;  %1577 = vpow2.f32 %v916_v61  ;;  %v983_v14 = vmul.f32 1.050701, %v967_v42 }
 0x1b2   :  { %v1568_v53 = vpop.eup %1567  ;;  %v1460_v55 = vadd.f32 -1.0, %v1566_v47  ;;  %v846_v59 = vpop.f32.mrf.mxu2  ;;  %1579 = vpow2.f32 %v908_v5 }
 0x1b3   :  { %v875_v15 = vpop.f32.mrf.mxu3  ;;  %v1461_v3 = vadd.f32 -1.0, %v1568_v53  ;;  %v2354_v56 = vadd.f32 %v846_v59, %v2307_v54  ;;  %v1570_v7 = vpop.eup %1569 }
 0x1b4   :  { %v2357_v6 = vadd.f32 %v875_v15, %v2307_v54  ;;  %v954_v20 = vmul.f32 1.6732632, %v1460_v55  ;;  %v1572_v39 = vpop.eup %1571  ;;  %v966_v54 = vsel %vm886_vm0, %v2319_v23, %v950_v45  ;;  %v1450_v19 = vadd.f32 -1.0, %v1570_v7 }
 0x1b5   :  { %v955_v27 = vmul.f32 1.6732632, %v1461_v3  ;;  %v922_v26 = vmul.f32 1.442695, %v2354_v56  ;;  %v1574_v29 = vpop.eup %1573  ;;  %v982_v23 = vmul.f32 1.050701, %v966_v54 }
 0x1b6   :  { %v970_v32 = vsel %vm890_vm2, %v789_v11, %v954_v20  ;;  %v924_v35 = vmul.f32 1.442695, %v2357_v6  ;;  %v1576_v57 = vpop.eup %1575  ;;  %v1454_v22 = vadd.f32 -1.0, %v1574_v29  ;;  %v1451_v8 = vadd.f32 -1.0, %v1572_v39  ;;  %v1002_v29 = vpop.permute.xlu2 %1001 }
 0x1b7   :  { %v986_v10 = vmul.f32 1.050701, %v970_v32  ;;  %v971_v62 = vsel %vm891_vm4, %v2333_v46, %v955_v27  ;;  %1581 = vpow2.f32 %v922_v26  ;;  %v1578_v31 = vpop.eup %1577  ;;  %v963_v46 = vsel %vm883_vm5, %v2317_v60, %v947_v17 }
 0x1b8   :  { %v987_v11 = vmul.f32 1.050701, %v971_v62  ;;  %1583 = vpow2.f32 %v924_v35  ;;  %v1580_v0 = vpop.eup %1579  ;;  %v1458_v41 = vadd.f32 -1.0, %v1576_v57  ;;  %v1459_v48 = vadd.f32 -1.0, %v1578_v31 }
 0x1b9   :  { %1464 = vmatpush.msk.msra.mxu0 %vm1011_vm3, %v986_v10  ;;  %v979_v25 = vmul.f32 1.050701, %v963_v46  ;;  %v1455_v60 = vadd.f32 -1.0, %v1580_v0  ;;  %v944_v61 = vmul.f32 1.6732632, %v1450_v19  ;;  %vm892_vm11 = vcmp.gt.f32.partialorder %v2354_v56, 0.0 }
 0x1ba   :  { %1467 = vmatpush.msk.msra.mxu1 %vm1011_vm3, %v987_v11  ;;  %v952_v4 = vmul.f32 1.6732632, %v1458_v41  ;;  %v953_v43 = vmul.f32 1.6732632, %v1459_v48  ;;  %v948_v1 = vmul.f32 1.6732632, %v1454_v22 }
 0x1bb   :  { %1037 = vmatpush.msra.mxu0 %v982_v23  ;;  %v949_v2 = vmul.f32 1.6732632, %v1455_v60  ;;  %vm893_vm13 = vcmp.gt.f32.partialorder %v2357_v6, 0.0  ;;  %v945_v51 = vmul.f32 1.6732632, %v1451_v8  ;;  %vm881_vm0 = vcmp.gt.f32.partialorder %v2329_v44, 0.0 }
 0x1bc   :  { %1060 = vmatpush.msra.mxu1 %v983_v14  ;;  %v968_v38 = vsel %vm888_vm10, %v2340_v50, %v952_v4  ;;  %v969_v55 = vsel %vm889_vm12, %v2342_v49, %v953_v43  ;;  %v964_v15 = vsel %vm884_vm9, %v2335_v63, %v948_v1  ;;  %v991_v50 = vld [vmem:[%s2435_s5 + $0x8] sm:$0xf]  ;;  %vm1183_vm5 = vcmask 1043456   ;;  %v1172_v1 = vld [vmem:[%s2437_s7] sm:$0xf]  ;;  %s1636_s7 = smov [#allocation2]  }
 0x1bd   :  { %v1582_v30 = vpop.eup %1581  ;;  %1038 = vmatpush.msra.mxu0 %v978_v12  ;;  %v984_v58 = vmul.f32 1.050701, %v968_v38  ;;  %v965_v3 = vsel %vm885_vm14, %v2345_v28, %v949_v2  ;;  %v985_v49 = vmul.f32 1.050701, %v969_v55  ;;  %v980_v63 = vmul.f32 1.050701, %v964_v15 }
 0x1be   :  { %v1584_v34 = vpop.eup %1583  ;;  %v1462_v37 = vadd.f32 -1.0, %v1582_v30  ;;  %1061 = vmatpush.msra.mxu1 %v979_v25  ;;  %v981_v7 = vmul.f32 1.050701, %v965_v3  ;;  %s1297_s16 = sshll.u32 %s1636_s7, 4  ;;  %s1298_s16 = int_to_ptr.vmem [resolvable:$true] %s1297_s16 }
 0x1bf   :  { %v1463_v18 = vadd.f32 -1.0, %v1584_v34  ;;  %1039 = vmatpush.msra.mxu0 %v974_v24 }
 0x1c0   :  { %v956_v36 = vmul.f32 1.6732632, %v1462_v37  ;;  %1062 = vmatpush.msra.mxu1 %v975_v40  ;;  %1465 = vmatmul.msk.f32.vlgmr.msra.gmra.mxu0 %vm1004_vm8, %v990_v52 }
 0x1c1   :  { %v957_v5 = vmul.f32 1.6732632, %v1463_v18  ;;  %1468 = vmatmul.msk.f32.vlgmr.msra.gmra.mxu1 %vm1004_vm8, %v990_v52 }
 0x1c2   :  { %v972_v47 = vsel %vm892_vm11, %v2354_v56, %v956_v36  ;;  %v960_v56 = vsel %vm880_vm15, %v2327_v21, %v944_v61  ;;  %v997_v21 = vpop.permute.xlu0 %996 }
 0x1c3   :  { %v988_v53 = vmul.f32 1.050701, %v972_v47  ;;  %v973_v45 = vsel %vm893_vm13, %v2357_v6, %v957_v5  ;;  %v961_v6 = vsel %vm881_vm0, %v2329_v44, %v945_v51  ;;  %v976_v9 = vmul.f32 1.050701, %v960_v56 }
 0x1c4   :  { %v989_v59 = vmul.f32 1.050701, %v973_v45  ;;  %v977_v28 = vmul.f32 1.050701, %v961_v6 }
 0x1c5   :  { %1470 = vmatpush.msk.msra.mxu2 %vm1011_vm3, %v988_v53 }
 0x1c6   :  { %1473 = vmatpush.msk.msra.mxu3 %vm1011_vm3, %v989_v59 }
 0x1c7   :  { %1083 = vmatpush.msra.mxu2 %v984_v58 }
 0x1c8   :  { %1106 = vmatpush.msra.mxu3 %v985_v49  ;;  %1466 = vmatmul.msk.f32.gmra.mxu0 %vm1004_vm8, %v991_v50 }
 0x1c9   :  { %1469 = vmatmul.msk.f32.gmra.mxu1 %vm1004_vm8, %v991_v50  ;;  %1084 = vmatpush.msra.mxu2 %v980_v63 }
 0x1ca   :  { %1107 = vmatpush.msra.mxu3 %v981_v7 }
 0x1cb   :  { %1085 = vmatpush.msra.mxu2 %v976_v9 }
 0x1cc   :  { %1108 = vmatpush.msra.mxu3 %v977_v28  ;;  %1471 = vmatmul.msk.f32.vlgmr.msra.gmra.mxu2 %vm1004_vm8, %v990_v52 }
 0x1cd   :  { %1474 = vmatmul.msk.f32.vlgmr.msra.gmra.mxu3 %vm1004_vm8, %v990_v52 }
 0x1d4   :  { %1472 = vmatmul.msk.f32.gmra.mxu2 %vm1004_vm8, %v991_v50 }
 0x1d5   :  { %1475 = vmatmul.msk.f32.gmra.mxu3 %vm1004_vm8, %v991_v50 }
 0x23d   :  { %v1041_v44 = vpop.f32.mrf.mxu0 }
 0x23e   :  { %v1042_v17 = vadd.f32 %v1041_v44, %v997_v21  ;;  %v1064_v20 = vpop.f32.mrf.mxu1 }
 0x23f   :  { %v1065_v39 = vadd.f32 %v1064_v20, %v997_v21 }
 0x240   :  { %v1124_v27 = vmul.f32 1.442695, %v1042_v17  ;;  %vm1116_vm1 = vcmp.gt.f32.partialorder %v1042_v17, 0.0 }
 0x241   :  { %v1126_v26 = vmul.f32 1.442695, %v1065_v39  ;;  %vm1117_vm2 = vcmp.gt.f32.partialorder %v1065_v39, 0.0 }
 0x242   :  { %1585 = vpow2.f32 %v1124_v27 }
 0x243   :  { %1587 = vpow2.f32 %v1126_v26 }
 0x245   :  { %v1044_v32 = vpop.f32.mrf.mxu0 }
 0x246   :  { %v1045_v35 = vadd.f32 %v1044_v32, %v1002_v29  ;;  %v1067_v54 = vpop.f32.mrf.mxu1 }
 0x247   :  { %v1068_v57 = vadd.f32 %v1067_v54, %v1002_v29 }
 0x248   :  { %v1132_v10 = vmul.f32 1.442695, %v1045_v35  ;;  %v1586_v42 = vpop.eup %1585  ;;  %vm1120_vm3 = vcmp.gt.f32.partialorder %v1045_v35, 0.0 }
 0x249   :  { %v1134_v62 = vmul.f32 1.442695, %v1068_v57  ;;  %v1588_v31 = vpop.eup %1587  ;;  %v1476_v11 = vadd.f32 -1.0, %v1586_v42  ;;  %vm1121_vm4 = vcmp.gt.f32.partialorder %v1068_v57, 0.0 }
 0x24a   :  { %1589 = vpow2.f32 %v1132_v10  ;;  %v1477_v13 = vadd.f32 -1.0, %v1588_v31 }
 0x24b   :  { %1591 = vpow2.f32 %v1134_v62  ;;  %v1148_v33 = vmul.f32 1.6732632, %v1476_v11 }
 0x24c   :  { %v1149_v16 = vmul.f32 1.6732632, %v1477_v13 }
 0x24d   :  { %v1156_v52 = vsel %vm1116_vm1, %v1042_v17, %v1148_v33 }
 0x24e   :  { %v1157_v37 = vsel %vm1117_vm2, %v1065_v39, %v1149_v16  ;;  %v1164_v61 = vmul.f32 1.050701, %v1156_v52  ;;  %v1177_v39 = vpop.permute.xlu1 %1176 }
 0x24f   :  { %v1087_v23 = vpop.f32.mrf.mxu2  ;;  %v1165_v2 = vmul.f32 1.050701, %v1157_v37 }
 0x250   :  { %v1590_v46 = vpop.eup %1589  ;;  %v1088_v0 = vadd.f32 %v1087_v23, %v997_v21  ;;  %v1110_v41 = vpop.f32.mrf.mxu3 }
 0x251   :  { %v1592_v14 = vpop.eup %1591  ;;  %v1480_v48 = vadd.f32 -1.0, %v1590_v46  ;;  %v1111_v12 = vadd.f32 %v1110_v41, %v997_v21 }
 0x252   :  { %v1481_v19 = vadd.f32 -1.0, %v1592_v14  ;;  %v1128_v22 = vmul.f32 1.442695, %v1088_v0  ;;  %vm1118_vm7 = vcmp.gt.f32.partialorder %v1088_v0, 0.0 }
 0x253   :  { %v1152_v25 = vmul.f32 1.6732632, %v1480_v48  ;;  %v1130_v30 = vmul.f32 1.442695, %v1111_v12  ;;  %vm1119_vm9 = vcmp.gt.f32.partialorder %v1111_v12, 0.0 }
 0x254   :  { %v1153_v60 = vmul.f32 1.6732632, %v1481_v19  ;;  %1593 = vpow2.f32 %v1128_v22 }
 0x255   :  { %v1160_v24 = vsel %vm1120_vm3, %v1045_v35, %v1152_v25  ;;  %1595 = vpow2.f32 %v1130_v30 }
 0x256   :  { %v1168_v34 = vmul.f32 1.050701, %v1160_v24  ;;  %v1161_v4 = vsel %vm1121_vm4, %v1068_v57, %v1153_v60 }
 0x257   :  { %v1169_v40 = vmul.f32 1.050701, %v1161_v4  ;;  %v1090_v8 = vpop.f32.mrf.mxu2 }
 0x258   :  { %v1091_v43 = vadd.f32 %v1090_v8, %v1002_v29  ;;  %v1113_v18 = vpop.f32.mrf.mxu3  ;;  %1484 = vmatpush.msk.msrb.mxu0 %vm1183_vm5, %v1168_v34 }
 0x259   :  { %v1114_v36 = vadd.f32 %v1113_v18, %v1002_v29  ;;  %1486 = vmatpush.msk.msrb.mxu1 %vm1183_vm5, %v1169_v40 }
 0x25a   :  { %v1136_v5 = vmul.f32 1.442695, %v1091_v43  ;;  %1211 = vmatpush.msrb.mxu0 %v1164_v61  ;;  %v1594_v38 = vpop.eup %1593  ;;  %vm1122_vm8 = vcmp.gt.f32.partialorder %v1091_v43, 0.0 }
 0x25b   :  { %v1138_v47 = vmul.f32 1.442695, %v1114_v36  ;;  %1231 = vmatpush.msrb.mxu1 %v1165_v2  ;;  %1485 = vmatmul.msk.f32.vlgmr.msrb.gmra.mxu0 %vm1179_vm6, %v1172_v1  ;;  %v1596_v51 = vpop.eup %1595  ;;  %v1478_v53 = vadd.f32 -1.0, %v1594_v38  ;;  %vm1123_vm10 = vcmp.gt.f32.partialorder %v1114_v36, 0.0 }
 0x25c   :  { %1597 = vpow2.f32 %v1136_v5  ;;  %1487 = vmatmul.msk.f32.vlgmr.msrb.gmra.mxu1 %vm1179_vm6, %v1172_v1  ;;  %v1479_v45 = vadd.f32 -1.0, %v1596_v51 }
 0x25d   :  { %1599 = vpow2.f32 %v1138_v47  ;;  %v1150_v15 = vmul.f32 1.6732632, %v1478_v53 }
 0x25e   :  { %v1151_v50 = vmul.f32 1.6732632, %v1479_v45 }
 0x25f   :  { %v1158_v6 = vsel %vm1118_vm7, %v1088_v0, %v1150_v15 }
 0x260   :  { %v1159_v28 = vsel %vm1119_vm9, %v1111_v12, %v1151_v50  ;;  %v1166_v44 = vmul.f32 1.050701, %v1158_v6 }
 0x261   :  { %v1167_v17 = vmul.f32 1.050701, %v1159_v28 }
 0x262   :  { %v1598_v55 = vpop.eup %1597 }
 0x263   :  { %v1600_v59 = vpop.eup %1599  ;;  %v1482_v58 = vadd.f32 -1.0, %v1598_v55 }
 0x264   :  { %v1483_v3 = vadd.f32 -1.0, %v1600_v59 }
 0x265   :  { %v1154_v49 = vmul.f32 1.6732632, %v1482_v58 }
 0x266   :  { %v1155_v56 = vmul.f32 1.6732632, %v1483_v3 }
 0x267   :  { %v1162_v63 = vsel %vm1122_vm8, %v1091_v43, %v1154_v49 }
 0x268   :  { %v1170_v7 = vmul.f32 1.050701, %v1162_v63  ;;  %v1163_v9 = vsel %vm1123_vm10, %v1114_v36, %v1155_v56 }
 0x269   :  { %v1171_v21 = vmul.f32 1.050701, %v1163_v9 }
 0x26a   :  { %1488 = vmatpush.msk.msrb.mxu2 %vm1183_vm5, %v1170_v7 }
 0x26b   :  { %1490 = vmatpush.msk.msrb.mxu3 %vm1183_vm5, %v1171_v21 }
 0x26c   :  { %1251 = vmatpush.msrb.mxu2 %v1166_v44 }
 0x26d   :  { %1271 = vmatpush.msrb.mxu3 %v1167_v17  ;;  %1489 = vmatmul.msk.f32.vlgmr.msrb.gmra.mxu2 %vm1179_vm6, %v1172_v1 }
 0x26e   :  { %1491 = vmatmul.msk.f32.vlgmr.msrb.gmra.mxu3 %vm1179_vm6, %v1172_v1 }
 0x2d8   :  { %v1213_v20 = vpop.f32.mrf.mxu0 }
 0x2d9   :  { %v1233_v27 = vpop.f32.mrf.mxu1  ;;  %v1214_v26 = vadd.f32 %v1213_v20, %v1177_v39 }
 0x2da   :  { %v1234_v29 = vadd.f32 %v1233_v27, %v1177_v39 }
 0x2dc   :  { %1601 = vtanh.f32 %v1234_v29 }
 0x2dd   :  { %1603 = vtanh.f32 %v1214_v26 }
 0x2e2   :  { %v1602_v32 = vpop.eup %1601 }
 0x2e3   :  { %v1284_v35 = vrot.slane %v1602_v32, 4  ;;  %v1604_v54 = vpop.eup %1603 }
 0x2e5   :  { %v1286_v57 = vsel %vm1183_vm5, %v1604_v54, %v1284_v35 }
 0x2e6   :  { %1290 = vst [vmem:[#allocation2] sm:$0xff] %v1286_v57 }
 0x2f0   :  { %v1253_v10 = vpop.f32.mrf.mxu2 }
 0x2f1   :  { %v1273_v62 = vpop.f32.mrf.mxu3  ;;  %v1254_v42 = vadd.f32 %v1253_v10, %v1177_v39 }
 0x2f2   :  { %v1274_v31 = vadd.f32 %v1273_v62, %v1177_v39 }
 0x2f4   :  { %1605 = vtanh.f32 %v1274_v31 }
 0x2f5   :  { %1607 = vtanh.f32 %v1254_v42 }
 0x2fa   :  { %v1606_v11 = vpop.eup %1605 }
 0x2fb   :  { %v1285_v13 = vrot.slane %v1606_v11, 4  ;;  %v1608_v23 = vpop.eup %1607 }
 0x2fd   :  { %v1287_v46 = vsel %vm1183_vm5, %v1608_v23, %v1285_v13 }
 0x2fe   :  { %1291 = vst [vmem:[#allocation2 + $0x8] sm:$0xff] %v1287_v46 }
 0x2ff   :  { %1302 = dma.vmem_to_hbm [thread:$0]  %s1298_s16, 256, %s1300_s2, [#allocation3]  }
 0x300   :  { %1633 = dma.done.wait [#allocation3], 256  }
 0x301   :  { %1634 = vsyncadd [#allocation3], 4294967040 }
 0x302   :  { %1307 = vsyncpa [#allocation3], 1 }

</bundles_post_ra>
